<compile_context>
chip_gen: v6e
topology: v6e:2x2x1
jax: 0.10.0
libtpu: 0.0.40
codegen_flags: <defaults>
</compile_context>

<pallas_src>
import jax
import jax.numpy as jnp
from jax.experimental import pallas as pl
from jax.experimental.pallas import tpu as pltpu

SUBLANE = 8  # sublane (second-to-last dim) granularity


def _round_up(x, m):
    return ((x + m - 1) // m) * m


def user_tower_kernel(x_ref, w1_ref, b1_ref, w2_ref, b2_ref, o_ref):
    # hidden = relu(x @ W1 + b1): MXU matmul with f32 accumulation,
    # bias add + relu in f32 regardless of input/weight dtype.
    h = jnp.dot(x_ref[...], w1_ref[...], preferred_element_type=jnp.float32)
    h = jnp.maximum(h + b1_ref[...], 0.0)
    # out = relu(h @ W2 + b2): cast h to the weight dtype only for the MXU feed
    # (no-op when weights are f32), accumulate in f32.
    o = jnp.dot(h.astype(w2_ref.dtype), w2_ref[...],
                preferred_element_type=jnp.float32)
    o = jnp.maximum(o + b2_ref[...], 0.0)
    o_ref[...] = o.astype(o_ref.dtype)


def user_tower(x, w1, b1, w2, b2, *, tile_b=4096, out_dtype=jnp.float32):
    """Fused relu(relu(x @ W1 + b1) @ W2 + b2).

    x:  (B, user_dim)          activations (f32 or bf16)
    w1: (user_dim, hidden)     stored as (in, out) == torch weight transposed
    b1: (hidden,) or (1, hidden)
    w2: (hidden, hidden)
    b2: (hidden,) or (1, hidden)
    returns (B, hidden) in out_dtype (default f32; pass bf16 to halve writeback)
    """
    B, D = x.shape
    Din, H = w1.shape
    assert Din == D and w2.shape == (H, H)

    # Batch tile: multiple of 8 sublanes, no larger than needed, and capped at
    # ~ceil(B/2) so the parallel batch axis has >= 2 steps (keeps both v7x TCs
    # busy; costs only one extra cheap step on single-TC chips).
    tile_b = min(tile_b, _round_up(B, SUBLANE))
    tile_b = min(tile_b, max(SUBLANE, _round_up(-(-B // 2), SUBLANE)))
    grid = (pl.cdiv(B, tile_b),)   # ragged last block handled by masked stores

    # Biases stay f32 (post-matmul elementwise math is f32 on all chips).
    b1_r = b1.reshape(1, H).astype(jnp.float32)
    b2_r = b2.reshape(1, H).astype(jnp.float32)

    bytes_accessed = (x.size * x.dtype.itemsize
                      + w1.size * w1.dtype.itemsize
                      + w2.size * w2.dtype.itemsize
                      + b1_r.size * 4 + b2_r.size * 4
                      + B * H * jnp.dtype(out_dtype).itemsize)
    cost = pl.CostEstimate(
        flops=2 * B * D * H + 2 * B * H * H,
        transcendentals=0,
        bytes_accessed=bytes_accessed,
    )

    return pl.pallas_call(
        user_tower_kernel,
        out_shape=jax.ShapeDtypeStruct((B, H), out_dtype),
        grid=grid,
        in_specs=[
            pl.BlockSpec((tile_b, D), lambda i: (i, 0)),  # x: batch-tiled
            pl.BlockSpec((D, H), lambda i: (0, 0)),       # W1: VMEM-resident
            pl.BlockSpec((1, H), lambda i: (0, 0)),       # b1: VMEM-resident
            pl.BlockSpec((H, H), lambda i: (0, 0)),       # W2: VMEM-resident
            pl.BlockSpec((1, H), lambda i: (0, 0)),       # b2: VMEM-resident
        ],
        out_specs=pl.BlockSpec((tile_b, H), lambda i: (i, 0)),
        compiler_params=pltpu.CompilerParams(
            dimension_semantics=("parallel",),            # v7x: shard over 2 TCs
        ),
        cost_estimate=cost,
    )(x, w1, b1_r, w2, b2_r)


def init_params(key, user_dim=64, hidden_dim=64, dtype=jnp.float32):
    """Deterministic synthetic init (PyTorch-Linear-like uniform fan-in bound)."""
    k1, k2, k3, k4 = jax.random.split(key, 4)
    bound1 = 1.0 / (user_dim ** 0.5)
    bound2 = 1.0 / (hidden_dim ** 0.5)
    # stored as (in, out) == torch weight (out, in) transposed
    w1 = jax.random.uniform(k1, (user_dim, hidden_dim), jnp.float32, -bound1, bound1)
    b1 = jax.random.uniform(k2, (hidden_dim,), jnp.float32, -bound1, bound1)
    w2 = jax.random.uniform(k3, (hidden_dim, hidden_dim), jnp.float32, -bound2, bound2)
    b2 = jax.random.uniform(k4, (hidden_dim,), jnp.float32, -bound2, bound2)
    return w1.astype(dtype), b1, w2.astype(dtype), b2


def _ref(x, w1, b1, w2, b2):
    h = jnp.maximum(x.astype(jnp.float32) @ w1.astype(jnp.float32) + b1, 0.0)
    return jnp.maximum(h @ w2.astype(jnp.float32) + b2, 0.0)


if __name__ == "__main__":
    key = jax.random.PRNGKey(0)
    kx, kp, kx2 = jax.random.split(key, 3)

    user_dim, hidden_dim = 64, 64
    w1, b1, w2, b2 = init_params(kp, user_dim, hidden_dim)

    # --- Test 1: small batch (module-sized), f32 weights ---
    batch = 8
    x = jax.random.normal(kx, (batch, user_dim), jnp.float32)
    out = jax.block_until_ready(user_tower(x, w1, b1, w2, b2))
    ref = _ref(x, w1, b1, w2, b2)
    assert out.shape == (batch, hidden_dim)
    assert jnp.allclose(out, ref, atol=1e-5, rtol=1e-5)

    # --- Test 2: larger, non-multiple batch exercising the ragged edge block ---
    batch2 = 300
    x2 = jax.random.normal(kx2, (batch2, user_dim), jnp.float32)
    out2 = jax.block_until_ready(user_tower(x2, w1, b1, w2, b2, tile_b=128))
    ref2 = _ref(x2, w1, b1, w2, b2)
    assert out2.shape == (batch2, hidden_dim)
    assert jnp.allclose(out2, ref2, atol=1e-5, rtol=1e-5)

    # --- Test 3: bf16 weights/activations + bf16 output (halved writeback) ---
    out3 = jax.block_until_ready(
        user_tower(x2.astype(jnp.bfloat16), w1.astype(jnp.bfloat16), b1,
                   w2.astype(jnp.bfloat16), b2, tile_b=128,
                   out_dtype=jnp.bfloat16))
    assert out3.shape == (batch2, hidden_dim)
    assert jnp.allclose(out3.astype(jnp.float32), ref2, atol=2e-1, rtol=5e-2)

    print("KERNEL_OK")
</pallas_src>

<mosaic_0001>
module attributes {stable_mosaic.version = 11 : i64} {
  func.func @user_tower_kernel(%arg0: i32, %arg1: memref<8x64xf32, #tpu.memory_space<vmem>>, %arg2: memref<64x64xf32, #tpu.memory_space<vmem>>, %arg3: memref<1x64xf32, #tpu.memory_space<vmem>>, %arg4: memref<64x64xf32, #tpu.memory_space<vmem>>, %arg5: memref<1x64xf32, #tpu.memory_space<vmem>>, %arg6: memref<8x64xf32, #tpu.memory_space<vmem>>) attributes {dimension_semantics = [#tpu.dimension_semantics<parallel>], iteration_bounds = array<i64: 1>, scalar_prefetch = 0 : i64, scratch_operands = 0 : i64, tpu.core_type = #tpu.core_type<tc>, window_params = [{transform_indices = @transform_0, window_bounds = array<i64: 8, 64>}, {pipeline_mode = #tpu.pipeline_mode<synchronous>, transform_indices = @transform_1, window_bounds = array<i64: 64, 64>}, {pipeline_mode = #tpu.pipeline_mode<synchronous>, transform_indices = @transform_2, window_bounds = array<i64: 1, 64>}, {pipeline_mode = #tpu.pipeline_mode<synchronous>, transform_indices = @transform_3, window_bounds = array<i64: 64, 64>}, {pipeline_mode = #tpu.pipeline_mode<synchronous>, transform_indices = @transform_4, window_bounds = array<i64: 1, 64>}, {transform_indices = @transform_5, window_bounds = array<i64: 8, 64>}]} {
    %c0 = arith.constant 0 : index
    %c0_0 = arith.constant 0 : index
    %0 = vector.load %arg1[%c0, %c0_0] : memref<8x64xf32, #tpu.memory_space<vmem>>, vector<8x64xf32>
    %c0_1 = arith.constant 0 : index
    %c0_2 = arith.constant 0 : index
    %1 = vector.load %arg2[%c0_1, %c0_2] : memref<64x64xf32, #tpu.memory_space<vmem>>, vector<64x64xf32>
    %cst = arith.constant dense<0.000000e+00> : vector<8x64xf32>
    %2 = tpu.matmul %0, %1, %cst {dimension_numbers = #tpu.dot_dimension_numbers<[1], [0], [0], [1], [0, 0, 1, 1], [], []>} : vector<8x64xf32>, vector<64x64xf32>, vector<8x64xf32> -> vector<8x64xf32>
    %c0_3 = arith.constant 0 : index
    %c0_4 = arith.constant 0 : index
    %3 = vector.load %arg3[%c0_3, %c0_4] : memref<1x64xf32, #tpu.memory_space<vmem>>, vector<1x64xf32>
    %4 = vector.broadcast %3 : vector<1x64xf32> to vector<8x64xf32>
    %5 = arith.addf %2, %4 : vector<8x64xf32>
    %cst_5 = arith.constant 0.000000e+00 : f32
    %6 = vector.broadcast %cst_5 : f32 to vector<8x64xf32>
    %7 = arith.maximumf %5, %6 : vector<8x64xf32>
    %c0_6 = arith.constant 0 : index
    %c0_7 = arith.constant 0 : index
    %8 = vector.load %arg4[%c0_6, %c0_7] : memref<64x64xf32, #tpu.memory_space<vmem>>, vector<64x64xf32>
    %cst_8 = arith.constant dense<0.000000e+00> : vector<8x64xf32>
    %9 = tpu.matmul %7, %8, %cst_8 {dimension_numbers = #tpu.dot_dimension_numbers<[1], [0], [0], [1], [0, 0, 1, 1], [], []>} : vector<8x64xf32>, vector<64x64xf32>, vector<8x64xf32> -> vector<8x64xf32>
    %c0_9 = arith.constant 0 : index
    %c0_10 = arith.constant 0 : index
    %10 = vector.load %arg5[%c0_9, %c0_10] : memref<1x64xf32, #tpu.memory_space<vmem>>, vector<1x64xf32>
    %11 = vector.broadcast %10 : vector<1x64xf32> to vector<8x64xf32>
    %12 = arith.addf %9, %11 : vector<8x64xf32>
    %cst_11 = arith.constant 0.000000e+00 : f32
    %13 = vector.broadcast %cst_11 : f32 to vector<8x64xf32>
    %14 = arith.maximumf %12, %13 : vector<8x64xf32>
    %c0_12 = arith.constant 0 : index
    %c0_13 = arith.constant 0 : index
    %15 = vector.load %arg6[%c0_12, %c0_13] : memref<8x64xf32, #tpu.memory_space<vmem>>, vector<8x64xf32>
    tpu.vector_store %arg6[%c0_12, %c0_13], %14 {strides = array<i32>} : memref<8x64xf32, #tpu.memory_space<vmem>>, vector<8x64xf32>,
    return
  }
  func.func @transform_0(%arg0: i32) -> (i32, i32) {
    %c0_i32 = arith.constant 0 : i32
    %c0_i32_0 = arith.constant 0 : i32
    return %arg0, %c0_i32 : i32, i32
  }
  func.func @transform_1(%arg0: i32) -> (i32, i32) {
    %c0_i32 = arith.constant 0 : i32
    %c0_i32_0 = arith.constant 0 : i32
    %c0_i32_1 = arith.constant 0 : i32
    return %c0_i32, %c0_i32_0 : i32, i32
  }
  func.func @transform_2(%arg0: i32) -> (i32, i32) {
    %c0_i32 = arith.constant 0 : i32
    %c0_i32_0 = arith.constant 0 : i32
    %c0_i32_1 = arith.constant 0 : i32
    return %c0_i32, %c0_i32_0 : i32, i32
  }
  func.func @transform_3(%arg0: i32) -> (i32, i32) {
    %c0_i32 = arith.constant 0 : i32
    %c0_i32_0 = arith.constant 0 : i32
    %c0_i32_1 = arith.constant 0 : i32
    return %c0_i32, %c0_i32_0 : i32, i32
  }
  func.func @transform_4(%arg0: i32) -> (i32, i32) {
    %c0_i32 = arith.constant 0 : i32
    %c0_i32_0 = arith.constant 0 : i32
    %c0_i32_1 = arith.constant 0 : i32
    return %c0_i32, %c0_i32_0 : i32, i32
  }
  func.func @transform_5(%arg0: i32) -> (i32, i32) {
    %c0_i32 = arith.constant 0 : i32
    %c0_i32_0 = arith.constant 0 : i32
    return %arg0, %c0_i32 : i32, i32
  }
}

</mosaic_0001>

<bundles_post_ra>
// kernel: tpu_custom_call.1
= control target key start
LH: loop header
LB: loop body
LE: loop exit
PB: predicated region body
PF: predicated region fallthrough
CT: control target
= control target key end

     0   :  { %10 = vsyncpa [#allocation3], 0  ;;  %s470_s0 = inlined_call_operand.hbm [shape: f32[8,64], index: 0, kind: input, shape index: {}]   ;;  %s471_s1 = inlined_call_operand.hbm [shape: f32[64,64], index: 1, kind: input, shape index: {}]   ;;  %s472_s2 = inlined_call_operand.vmem [shape: f32[1,64], index: 2, kind: input, shape index: {}]   ;;  %s473_s3 = inlined_call_operand.hbm [shape: f32[64,64], index: 3, kind: input, shape index: {}]   ;;  %s474_s4 = inlined_call_operand.vmem [shape: f32[1,64], index: 4, kind: input, shape index: {}]   ;;  %s475_s5 = inlined_call_operand.hbm [shape: f32[8,64], index: 5, kind: output, shape index: {}]  }
   0x1   :  { %11 = vsyncpa [#allocation6], 0 }
   0x2   :  { %12 = vsyncpa [#allocation4], 0  ;;  %s411_s18 = smov [#allocation5]  }
   0x3   :  { %s28_s19 = sshll.u32 %s411_s18, 4  ;;  %s29_s19 = int_to_ptr.vmem [resolvable:$true] %s28_s19 }
   0x4   :  { %s333_s20 = scalar_lea.vmem %s29_s19, 1024  ;;  %p338_p1 = scmp.lt.s32.totalorder %s29_s19, %s29_s19 }
   0x5   :  { %p334_p0 = scmp.ne.s32.totalorder %s29_s19, %s333_s20  ;;  %p339_p2 = scmp.lt.s32.totalorder %s333_s20, %s333_s20 }
   0x7   :  { %p340_p3 = por %p339_p2, %p338_p1 }
   0x9   :  { %p341_p4 = pnand %p340_p3, %p334_p0 }
   0xb   :  { %344 = shalt.err (!%p341_p4)
}
   0xc   :  { %s412_s21 = smov 128   ;;  %s413_s22 = smov 8  }
   0xd   :  { %34 = dma.hbm_to_vmem [thread:$0]  %s471_s1, 1024, %s29_s19, [#allocation6], %s412_s21, %s412_s21, %s413_s22  }
   0xe   :  { %s414_s25 = smov [#allocation2]   ;;  %s415_s27 = smov [#allocation7]  }
   0xf   :  { %s19_s26 = sshll.u32 %s414_s25, 4  ;;  %s42_s28 = sshll.u32 %s415_s27, 4  ;;  %s20_s26 = int_to_ptr.vmem [resolvable:$true] %s19_s26  ;;  %s43_s28 = int_to_ptr.vmem [resolvable:$true] %s42_s28 }
  0x10   :  { %s353_s29 = scalar_lea.vmem %s20_s26, 128  ;;  %p358_p6 = scmp.lt.s32.totalorder %s20_s26, %s20_s26 }
  0x11   :  { %p354_p5 = scmp.ne.s32.totalorder %s20_s26, %s353_s29  ;;  %p359_p7 = scmp.lt.s32.totalorder %s353_s29, %s353_s29 }
  0x13   :  { %p360_p8 = por %p359_p7, %p358_p6 }
  0x15   :  { %p361_p9 = pnand %p360_p8, %p354_p5 }
  0x17   :  { %364 = shalt.err (!%p361_p9)
}
  0x18   :  { %22 = dma.hbm_to_vmem [thread:$0]  %s470_s0, 128, %s20_s26, [#allocation3]  }
  0x19   :  { %s373_s7 = scalar_lea.vmem %s43_s28, 1024  ;;  %p378_p11 = scmp.lt.s32.totalorder %s43_s28, %s43_s28 }
  0x1a   :  { %p374_p10 = scmp.ne.s32.totalorder %s43_s28, %s373_s7  ;;  %p379_p12 = scmp.lt.s32.totalorder %s373_s7, %s373_s7 }
  0x1c   :  { %p380_p13 = por %p379_p12, %p378_p11 }
  0x1e   :  { %p381_p0 = pnand %p380_p13, %p374_p10 }
  0x20   :  { %384 = shalt.err (!%p381_p0)
}
  0x21   :  { %48 = dma.hbm_to_vmem [thread:$0]  %s473_s3, 1024, %s43_s28, [#allocation6], %s412_s21, %s412_s21, %s413_s22  }
  0x22   :  { %405 = dma.done.wait [#allocation3], 128  }
  0x23   :  { %406 = vsyncadd [#allocation3], 4294967168 }
  0x24   :  { %407 = dma.done.wait [#allocation6], 2048  }
  0x25   :  { %408 = vsyncadd [#allocation6], 4294965248  ;;  %v416_v0 = vmov 0.0   ;;  %vm417_vm0 = vmmov 0   ;;  %v68_v1 = vld [vmem:[#allocation5 + $0x38] sm:$0xff]  ;;  %v67_v2 = vld [vmem:[#allocation5 + $0x30] sm:$0xff] }
  0x26   :  { %279 = vmatprep.subr.mxu0 %v416_v0  ;;  %295 = vmatprep.mubr.msk.f32.mxu0 %vm417_vm0, %v416_v0  ;;  %v66_v3 = vld [vmem:[#allocation5 + $0x28] sm:$0xff]  ;;  %v158_v4 = vld [vmem:[#allocation7 + $0x38] sm:$0xff]  ;;  %v157_v5 = vld [vmem:[#allocation7 + $0x30] sm:$0xff]  ;;  %vm76_vm1 = vcmask 523264   ;;  %s418_s11 = smov [#allocation8]  }
  0x27   :  { %298 = vmatprep.subr.mxu1 %v416_v0  ;;  %314 = vmatprep.mubr.msk.f32.mxu1 %vm417_vm0, %v416_v0  ;;  %v65_v6 = vld [vmem:[#allocation5 + $0x20] sm:$0xff]  ;;  %v156_v7 = vld [vmem:[#allocation7 + $0x28] sm:$0xff]  ;;  %v64_v8 = vld [vmem:[#allocation5 + $0x18] sm:$0xff]  ;;  %s247_s12 = sshll.u32 %s418_s11, 4  ;;  %s248_s12 = int_to_ptr.vmem [resolvable:$true] %s247_s12 }
  0x28   :  { %280 = vmatpush3.msra.mxu0 %v68_v1  ;;  %299 = vmatpush3.msra.mxu1 %v158_v4  ;;  %v155_v9 = vld [vmem:[#allocation7 + $0x20] sm:$0xff]  ;;  %v63_v10 = vld [vmem:[#allocation5 + $0x10] sm:$0xff]  ;;  %v154_v11 = vld [vmem:[#allocation7 + $0x18] sm:$0xff]  ;;  %p390_p2 = scmp.lt.s32.totalorder %s248_s12, %s248_s12 }
  0x29   :  { %281 = vmatprep.subr.mxu0 %v416_v0  ;;  %300 = vmatprep.subr.mxu1 %v416_v0  ;;  %v62_v12 = vld [vmem:[#allocation5 + $0x8] sm:$0xff]  ;;  %v61_v13 = vld [vmem:[#allocation5] sm:$0xff]  ;;  %v60_v14 = vld [vmem:[#allocation2] sm:$0xff] }
  0x2a   :  { %282 = vmatpush3.msra.mxu0 %v67_v2  ;;  %301 = vmatpush3.msra.mxu1 %v157_v5  ;;  %v153_v15 = vld [vmem:[#allocation7 + $0x10] sm:$0xff]  ;;  %v152_v16 = vld [vmem:[#allocation7 + $0x8] sm:$0xff]  ;;  %v151_v17 = vld [vmem:[#allocation7] sm:$0xff] }
  0x2b   :  { %283 = vmatprep.subr.mxu0 %v416_v0  ;;  %302 = vmatprep.subr.mxu1 %v416_v0  ;;  %v257_v18 = vld [vmem:[%s472_s2] ss:$0 sm:$0xff]  ;;  %s385_s2 = scalar_lea.vmem %s248_s12, 128 }
  0x2c   :  { %284 = vmatpush3.msra.mxu0 %v66_v3  ;;  %303 = vmatpush3.msra.mxu1 %v156_v7  ;;  %v259_v23 = vld [vmem:[%s474_s4] ss:$0 sm:$0xff]  ;;  %p386_p1 = scmp.ne.s32.totalorder %s248_s12, %s385_s2  ;;  %p391_p3 = scmp.lt.s32.totalorder %s385_s2, %s385_s2 }
  0x2d   :  { %285 = vmatprep.subr.mxu0 %v416_v0  ;;  %304 = vmatprep.subr.mxu1 %v416_v0 }
  0x2e   :  { %286 = vmatpush3.msra.mxu0 %v65_v6  ;;  %305 = vmatpush3.msra.mxu1 %v155_v9  ;;  %p392_p4 = por %p391_p3, %p390_p2 }
  0x2f   :  { %287 = vmatprep.subr.mxu0 %v416_v0  ;;  %306 = vmatprep.subr.mxu1 %v416_v0 }
  0x30   :  { %288 = vmatpush3.msra.mxu0 %v64_v8  ;;  %307 = vmatpush3.msra.mxu1 %v154_v11  ;;  %p393_p5 = pnand %p392_p4, %p386_p1 }
  0x31   :  { %289 = vmatprep.subr.mxu0 %v416_v0  ;;  %308 = vmatprep.subr.mxu1 %v416_v0 }
  0x32   :  { %290 = vmatpush3.msra.mxu0 %v63_v10  ;;  %309 = vmatpush3.msra.mxu1 %v153_v15 }
  0x33   :  { %291 = vmatprep.subr.mxu0 %v416_v0  ;;  %310 = vmatprep.subr.mxu1 %v416_v0 }
  0x34   :  { %292 = vmatpush3.msra.mxu0 %v62_v12  ;;  %311 = vmatpush3.msra.mxu1 %v152_v16 }
  0x35   :  { %293 = vmatprep.subr.mxu0 %v416_v0  ;;  %312 = vmatprep.subr.mxu1 %v416_v0 }
  0x36   :  { %294 = vmatpush3.msra.mxu0 %v61_v13  ;;  %313 = vmatpush3.msra.mxu1 %v151_v17 }
  0x37   :  { %296 = vmatmul.mubr.msk.f32.vlgmr.msra.gmra.mxu0 %vm76_vm1, %v60_v14 }
  0xf7   :  { %v146_v19 = vpop.f32.mrf.mxu0 }
  0xf8   :  { %v147_v20 = vadd.f32 %v257_v18, %v146_v19 }
  0xf9   :  { %v297_v21 = vpop.f32.mrf.mxu0 }
  0xfa   :  { %v150_v22 = vmax.f32 %v147_v20, 0.0 }
  0xfc   :  { %315 = vmatmul.mubr.msk.f32.vlgmr.msra.gmra.mxu1 %vm76_vm1, %v150_v22 }
 0x1bc   :  { %v235_v24 = vpop.f32.mrf.mxu1 }
 0x1bd   :  { %v236_v25 = vadd.f32 %v259_v23, %v235_v24 }
 0x1be   :  { %v316_v26 = vpop.f32.mrf.mxu1 }
 0x1bf   :  { %v239_v27 = vmax.f32 %v236_v25, 0.0 }
 0x1c1   :  { %240 = vst.msk [vmem:[#allocation8] sm:$0xff] %vm76_vm1, %v239_v27 }
 0x1c2   :  { %396 = shalt.err (!%p393_p5)
}
 0x1c3   :  { %250 = dma.vmem_to_hbm [thread:$0]  %s248_s12, 128, %s475_s5, [#allocation4]  }
 0x1c4   :  { %409 = dma.done.wait [#allocation4], 128  }
 0x1c5   :  { %410 = vsyncadd [#allocation4], 4294967168 }
 0x1c6   :  { %254 = vsyncpa [#allocation3], 1 }
 0x1c7   :  { %255 = vsyncpa [#allocation6], 1 }
 0x1c8   :  { %256 = vsyncpa [#allocation4], 1 }

</bundles_post_ra>
